<compile_context>
chip_gen: v6e
topology: v6e:2x2x1
jax: 0.10.0
libtpu: 0.0.40
codegen_flags: <defaults>
</compile_context>

<pallas_src>
import functools

import jax
import jax.numpy as jnp
from jax.experimental import pallas as pl
from jax.experimental.pallas import tpu as pltpu

NUM_BOND_TYPE = 5
NUM_STEREO = 6
NUM_IS_CONJUGATED = 2
NUM_IS_IN_RING = 2
FULL_BOND_FEATURE_DIMS = [NUM_BOND_TYPE, NUM_STEREO, NUM_IS_CONJUGATED, NUM_IS_IN_RING]
NUM_FEATURES = len(FULL_BOND_FEATURE_DIMS)
TOTAL_ROWS = sum(FULL_BOND_FEATURE_DIMS)      # 15
PADDED_ROWS = 16                              # sublane-friendly row count

# Row offset of each feature inside the concatenated table: [0, 5, 11, 13].
FEATURE_OFFSETS = [0]
for _d in FULL_BOND_FEATURE_DIMS[:-1]:
    FEATURE_OFFSETS.append(FEATURE_OFFSETS[-1] + _d)

LANE = 128
SUBLANE = 16                       # bf16 sublane packing -> unmasked stores
TARGET_STEP_OUT_BYTES = 4 << 20    # aim for ~4 MiB of output writeback / step
VMEM_BUDGET_BYTES = 24 << 20       # double-buffered working-set cap (all gens)
VMEM_HEADROOM_BYTES = 4 << 20


def _round_up(x, m):
    return ((x + m - 1) // m) * m


def _cdiv(a, b):
    return (a + b - 1) // b


def _bond_encoder_kernel(bits_ref, table_ref, out_ref):
    """bits_ref: (tile, 1) int32 bitmask, bit r set <=> concat-table row r used.
    table_ref: (16, emb_dim) bf16.   out_ref: (tile, emb_dim) bf16/f32."""
    bits = bits_ref[...]                                                 # (tE, 1)
    t_e = bits.shape[0]
    rows = jax.lax.broadcasted_iota(jnp.int32, (t_e, PADDED_ROWS), 1)    # (tE, 16)
    # 3 VALU ops instead of 4 compares + 3 ORs + cast (multi-hot build).
    mh = (jnp.right_shift(bits, rows) & 1).astype(jnp.bfloat16)          # (tE, 16)
    # Single bf16 MXU matmul = all 4 gathers + feature sum (f32 accumulate).
    acc = jnp.dot(mh, table_ref[...], preferred_element_type=jnp.float32)
    out_ref[...] = acc.astype(out_ref.dtype)


def _footprint_bytes(tile, emb_dim, out_itemsize):
    """Double-buffered per-step VMEM footprint.  VMEM blocks are lane-padded to
    128 lanes, so the (tile, 1) int32 bitmask block really costs tile*512 B."""
    d_lane = _round_up(emb_dim, LANE)
    bits_buf = tile * LANE * 4
    out_buf = tile * d_lane * out_itemsize
    tbl_buf = PADDED_ROWS * d_lane * 2
    return 2 * (bits_buf + out_buf + tbl_buf)


def _pick_tile(e, emb_dim, out_itemsize):
    # Big enough that each step writes ~TARGET_STEP_OUT_BYTES of output.
    tile = _round_up(
        max(TARGET_STEP_OUT_BYTES // max(emb_dim * out_itemsize, 1), SUBLANE),
        SUBLANE)
    # Keep >= 2 grid programs when there is enough work (both v7x TensorCores).
    if e > 2 * SUBLANE:
        tile = min(tile, _round_up(_cdiv(e, 2), SUBLANE))
    # Shrink until the double-buffered footprint fits the VMEM budget.
    while tile > SUBLANE and _footprint_bytes(tile, emb_dim, out_itemsize) > VMEM_BUDGET_BYTES:
        tile = max(SUBLANE, _round_up(tile // 2, SUBLANE))
    if tile >= e:
        tile = e      # single block == full array dims (always a legal block)
    return tile


def init_bond_encoder_params(key, emb_dim):
    """Deterministic xavier_uniform init of the 4 embedding tables (f32)."""
    tables = []
    for i, dim in enumerate(FULL_BOND_FEATURE_DIMS):
        k = jax.random.fold_in(key, i)
        bound = (6.0 / (dim + emb_dim)) ** 0.5
        tables.append(jax.random.uniform(k, (dim, emb_dim), jnp.float32,
                                         minval=-bound, maxval=bound))
    return tables


@functools.partial(jax.jit, static_argnames=("out_dtype",))
def bond_encoder(edge_attr, tables, out_dtype=jnp.bfloat16):
    """edge_attr: [E, 4] integer categories (assumed in-range, like PyTorch).
    Returns [E, emb_dim].  Default out_dtype=bf16 halves the HBM writeback that
    bounds this kernel (f32 accumulation kept); pass jnp.float32 for exact
    dtype parity with the PyTorch module."""
    emb_dim = tables[0].shape[1]
    e = edge_attr.shape[0]
    out_itemsize = jnp.dtype(out_dtype).itemsize

    # Concatenated bf16 table, padded to 16 rows (row 15 is all-zero).
    concat = jnp.concatenate(tables, axis=0).astype(jnp.bfloat16)        # (15, D)
    concat = jnp.pad(concat, ((0, PADDED_ROWS - TOTAL_ROWS), (0, 0)))    # (16, D)

    # Fold the 4 per-edge indices into one 16-bit one-hot bitmask.
    # NOTE: out-of-range categories (which PyTorch would error on) are not
    # validated here and would silently select wrong / padded rows.
    offsets = jnp.asarray(FEATURE_OFFSETS, dtype=jnp.int32)              # [0,5,11,13]
    idx = edge_attr.astype(jnp.int32) + offsets[None, :]                 # (E, 4)
    onehots = jnp.left_shift(jnp.int32(1), idx)                          # (E, 4)
    bits = onehots[:, 0]
    for f in range(1, NUM_FEATURES):
        bits = bits | onehots[:, f]
    bits = bits[:, None]                                                 # (E, 1)

    tile = _pick_tile(e, emb_dim, out_itemsize)
    grid = _cdiv(e, tile)
    vmem_limit = min(
        max(_footprint_bytes(tile, emb_dim, out_itemsize) + VMEM_HEADROOM_BYTES,
            16 << 20),
        48 << 20)

    # TODO(synk): if downstream GNN layers accept a lane-padded activation slab,
    # hand them the (E, round_up(emb_dim,128)) buffer directly for fully
    # unmasked stores even when emb_dim % 128 != 0.
    out = pl.pallas_call(
        _bond_encoder_kernel,
        out_shape=jax.ShapeDtypeStruct((e, emb_dim), out_dtype),
        grid_spec=pltpu.PrefetchScalarGridSpec(
            num_scalar_prefetch=0,
            grid=(grid,),
            in_specs=[
                pl.BlockSpec((tile, 1), lambda i: (i, 0)),
                pl.BlockSpec((PADDED_ROWS, emb_dim), lambda i: (0, 0)),
            ],
            out_specs=pl.BlockSpec((tile, emb_dim), lambda i: (i, 0)),
        ),
        compiler_params=pltpu.CompilerParams(
            dimension_semantics=("parallel",),
            vmem_limit_bytes=int(vmem_limit),
        ),
    )(bits, concat)
    return out


def bond_encoder_ref(edge_attr, tables):
    """Pure-JAX reference mirroring the PyTorch forward (f32 tables)."""
    out = 0
    for i, tbl in enumerate(tables):
        out = out + tbl[edge_attr[:, i]]
    return out


if __name__ == "__main__":
    key = jax.random.PRNGKey(0)

    def make_edge_attr(k, num_edges):
        cols = []
        for i, dim in enumerate(FULL_BOND_FEATURE_DIMS):
            ki = jax.random.fold_in(k, i)
            cols.append(jax.random.randint(ki, (num_edges, 1), 0, dim, jnp.int32))
        return jnp.concatenate(cols, axis=1)

    # Case 1: small shapes, default bf16 output (fast writeback path).
    emb_dim, num_edges = 32, 8
    tables = init_bond_encoder_params(key, emb_dim)
    edge_attr = make_edge_attr(jax.random.PRNGKey(1), num_edges)        # (8, 4)
    out = jax.block_until_ready(bond_encoder(edge_attr, tables))
    assert out.shape == (num_edges, emb_dim) and out.dtype == jnp.bfloat16
    ref = bond_encoder_ref(edge_attr, tables)
    assert jnp.allclose(out.astype(jnp.float32), ref, atol=2e-2, rtol=2e-2)

    # Case 2: E not a multiple of the tile, emb_dim not a multiple of 128,
    # f32 output (dtype parity with the PyTorch module); exercises the
    # clipped partial last block (no padding / slice copies anywhere).
    emb_dim2, num_edges2 = 48, 50
    tables2 = init_bond_encoder_params(jax.random.fold_in(key, 7), emb_dim2)
    edge_attr2 = make_edge_attr(jax.random.PRNGKey(2), num_edges2)      # (50, 4)
    out2 = jax.block_until_ready(
        bond_encoder(edge_attr2, tables2, out_dtype=jnp.float32))
    assert out2.shape == (num_edges2, emb_dim2) and out2.dtype == jnp.float32
    ref2 = bond_encoder_ref(edge_attr2, tables2)
    assert jnp.allclose(out2, ref2, atol=1e-2, rtol=1e-2)

    print("KERNEL_OK")
</pallas_src>

<mosaic_0001>
module attributes {stable_mosaic.version = 11 : i64} {
  func.func @_bond_encoder_kernel(%arg0: i32, %arg1: memref<8x1xi32, #tpu.memory_space<vmem>>, %arg2: memref<16x32xbf16, #tpu.memory_space<vmem>>, %arg3: memref<8x32xbf16, #tpu.memory_space<vmem>>) attributes {dimension_semantics = [#tpu.dimension_semantics<parallel>], iteration_bounds = array<i64: 1>, scalar_prefetch = 0 : i64, scratch_operands = 0 : i64, tpu.core_type = #tpu.core_type<tc>, window_params = [{transform_indices = @transform_0, window_bounds = array<i64: 8, 1>}, {pipeline_mode = #tpu.pipeline_mode<synchronous>, transform_indices = @transform_1, window_bounds = array<i64: 16, 32>}, {transform_indices = @transform_2, window_bounds = array<i64: 8, 32>}]} {
    %c0 = arith.constant 0 : index
    %c0_0 = arith.constant 0 : index
    %0 = vector.load %arg1[%c0, %c0_0] : memref<8x1xi32, #tpu.memory_space<vmem>>, vector<8x1xi32>
    %1 = tpu.iota {dimensions = array<i32: 1>} : vector<8x16xi32>
    %2 = vector.broadcast %0 : vector<8x1xi32> to vector<8x16xi32>
    %3 = arith.shrsi %2, %1 : vector<8x16xi32>
    %c1_i32 = arith.constant 1 : i32
    %4 = vector.broadcast %c1_i32 : i32 to vector<8x16xi32>
    %5 = arith.andi %3, %4 : vector<8x16xi32>
    %6 = arith.sitofp %5 : vector<8x16xi32> to vector<8x16xbf16>
    %c0_1 = arith.constant 0 : index
    %c0_2 = arith.constant 0 : index
    %7 = vector.load %arg2[%c0_1, %c0_2] : memref<16x32xbf16, #tpu.memory_space<vmem>>, vector<16x32xbf16>
    %cst = arith.constant dense<0.000000e+00> : vector<8x32xf32>
    %8 = tpu.matmul %6, %7, %cst {dimension_numbers = #tpu.dot_dimension_numbers<[1], [0], [0], [1], [0, 0, 1, 1], [], []>} : vector<8x16xbf16>, vector<16x32xbf16>, vector<8x32xf32> -> vector<8x32xf32>
    %9 = arith.truncf %8 : vector<8x32xf32> to vector<8x32xbf16>
    %c0_3 = arith.constant 0 : index
    %c0_4 = arith.constant 0 : index
    %10 = vector.load %arg3[%c0_3, %c0_4] : memref<8x32xbf16, #tpu.memory_space<vmem>>, vector<8x32xbf16>
    tpu.vector_store %arg3[%c0_3, %c0_4], %9 {strides = array<i32>} : memref<8x32xbf16, #tpu.memory_space<vmem>>, vector<8x32xbf16>,
    return
  }
  func.func @transform_0(%arg0: i32) -> (i32, i32) {
    %c0_i32 = arith.constant 0 : i32
    %c0_i32_0 = arith.constant 0 : i32
    return %arg0, %c0_i32 : i32, i32
  }
  func.func @transform_1(%arg0: i32) -> (i32, i32) {
    %c0_i32 = arith.constant 0 : i32
    %c0_i32_0 = arith.constant 0 : i32
    %c0_i32_1 = arith.constant 0 : i32
    return %c0_i32, %c0_i32_0 : i32, i32
  }
  func.func @transform_2(%arg0: i32) -> (i32, i32) {
    %c0_i32 = arith.constant 0 : i32
    %c0_i32_0 = arith.constant 0 : i32
    return %arg0, %c0_i32 : i32, i32
  }
}

</mosaic_0001>

<bundles_post_ra>
// kernel: bond_encoder.1
= control target key start
LH: loop header
LB: loop body
LE: loop exit
PB: predicated region body
PF: predicated region fallthrough
CT: control target
= control target key end

     0   :  { %v130_v1 = vmov 0   ;;  %s158_s0 = inlined_call_operand.vmem [shape: s32[8,1], index: 0, kind: input, shape index: {}]   ;;  %s159_s1 = inlined_call_operand.vmem [shape: bf16[16,32], index: 1, kind: input, shape index: {}]   ;;  %s160_s2 = inlined_call_operand.hbm [shape: bf16[8,32], index: 2, kind: output, shape index: {}]  }
   0x1   :  { %v13_v0 = vld [vmem:[%s158_s0] sm:$0xff]  ;;  %106 = vset.pattern.permute.xlu0 %v130_v1 }
   0x2   :  { %v107_v2 = vld [vmem:[%s159_s1] sm:$0xff]  }
   0x3   :  { %7 = vsyncpa [#allocation3], 0  ;;  %17 = vperm.xlu0 %106, %v13_v0   ;;  %v131_v3 = vmov 0.0   ;;  %vm132_vm0 = vmmov 0   ;;  %v14_v4 = vlaneseq  ;;  %vm31_vm1 = vcmask 130048   ;;  %s133_s0 = smov [#allocation2]  }
   0x4   :  { %96 = vmatprep.subr.bf16.mxu0 %v131_v3  ;;  %98 = vmatprep.mubr.msk.bf16.mxu0 %vm132_vm0, %v131_v3  ;;  %s84_s13 = sshll.u32 %s133_s0, 4  ;;  %vm76_vm2 = vcmask 257024   ;;  %s85_s13 = int_to_ptr.vmem [resolvable:$true] %s84_s13 }
   0x5   :  { %97 = vmatpush3.bf16.msra.mxu0 %v107_v2  ;;  %v15_v5 = vand.u32 127, %v14_v4  ;;  %s108_s1 = scalar_lea.vmem %s85_s13, 64  ;;  %p113_p1 = scmp.lt.s32.totalorder %s85_s13, %s85_s13 }
   0x6   :  { %p109_p0 = scmp.ne.s32.totalorder %s85_s13, %s108_s1  ;;  %p114_p2 = scmp.lt.s32.totalorder %s108_s1, %s108_s1 }
   0x8   :  { %p115_p3 = por %p114_p2, %p113_p1 }
   0xa   :  { %p116_p4 = pnand %p115_p3, %p109_p0 }
  0x7e   :  { %v18_v6 = vpop.permute.xlu0 %17 }
  0x7f   :  { %v19_v7 = vshra.s32 %v18_v6, %v15_v5 }
  0x81   :  { %v20_v8 = vand.u32 1, %v19_v7 }
  0x83   :  { %v21_v9 = vcvt.s32.f32 %v20_v8 }
  0x85   :  { %v22_v10 = vpack.c.bf16 %v21_v9, %v21_v9 }
  0x87   :  { %99 = vmatmul.mubr.msk.bf16.vlgmr.msra.gmra.mxu0 %vm31_vm1, %v22_v10 }
 0x147   :  { %v69_v11 = vpop.f32.mrf.mxu0 }
 0x148   :  { %v75_v12 = vpack.c.bf16 %v69_v11, %v69_v11 }
 0x149   :  { %v100_v13 = vpop.f32.mrf.mxu0 }
 0x14a   :  { %77 = vst.msk [vmem:[#allocation2] sm:$0xf] %vm76_vm2, %v75_v12 }
 0x14b   :  { %v72_v14 = vpop.f32.mrf.mxu0 }
 0x14c   :  { %119 = shalt.err (!%p116_p4)
}
 0x14d   :  { %87 = dma.vmem_to_hbm [thread:$0]  %s85_s13, 64, %s160_s2, [#allocation3]   ;;  %v101_v15 = vpop.f32.mrf.mxu0 }
 0x14e   :  { %128 = dma.done.wait [#allocation3], 64  }
 0x14f   :  { %129 = vsyncadd [#allocation3], 4294967232 }
 0x150   :  { %91 = vsyncpa [#allocation3], 1 }

</bundles_post_ra>
